<compile_context>
chip_gen: v5e
topology: v5e:2x2
jax: 0.10.0
libtpu: 0.0.40
codegen_flags: <defaults>
</compile_context>

<pallas_src>
import functools

import jax
import jax.numpy as jnp
from jax.experimental import pallas as pl
from jax.experimental.pallas import tpu as pltpu

LANES = 128      # vreg lane width: batch occupies the lane axis
SUBLANES = 8     # f32 sublane tiling

# Packed-parameter layout (flat f32 vector, SMEM-resident):
W1_OFF = 0             # hl1.weight (1 -> 9): index W1_OFF + f
B1_OFF = W1_OFF + 9    # hl1.bias
W2_OFF = B1_OFF + 9    # hl2.weight (9 -> 4): row-major (in, out), W2_OFF + k*4 + n
B2_OFF = W2_OFF + 36   # hl2.bias
W3_OFF = B2_OFF + 4    # out.weight (4 -> 4): row-major (in, out), W3_OFF + k*4 + n
B3_OFF = W3_OFF + 16   # out.bias
N_PARAMS = B3_OFF + 4  # = 78
N_PARAMS_PAD = 128     # padded SMEM vector length


def _round_up(x, m):
    return (x + m - 1) // m * m


def dqn_kernel(p_ref, x_ref, o_ref):
    """One batch tile of the MLP, entirely on the VPU.

    p_ref : (128,) f32 in SMEM  -- packed weights/biases read as scalars (splat).
    x_ref : (TR, 128) f32       -- each element is one independent sample.
    o_ref : (4, TR, 128) f32    -- q-value n of sample (r, l) at o_ref[n, r, l].
    """
    x = x_ref[...]

    # hl1: Linear(1, 9) + ReLU  -> 9 scalar FMAs (K=1 is a scaled copy + bias)
    h1 = [
        jnp.maximum(p_ref[W1_OFF + f] * x + p_ref[B1_OFF + f], 0.0)
        for f in range(9)
    ]

    # hl2: Linear(9, 4) + ReLU  -> 4 x 9 unrolled scalar FMAs
    h2 = []
    for n in range(4):
        acc = p_ref[W2_OFF + n] * h1[0]
        for k in range(1, 9):
            acc = acc + p_ref[W2_OFF + k * 4 + n] * h1[k]
        h2.append(jnp.maximum(acc + p_ref[B2_OFF + n], 0.0))

    # out: Linear(4, 4)         -> 4 x 4 unrolled scalar FMAs, full-block stores
    for n in range(4):
        acc = p_ref[W3_OFF + n] * h2[0]
        for k in range(1, 4):
            acc = acc + p_ref[W3_OFF + k * 4 + n] * h2[k]
        o_ref[n, :, :] = acc + p_ref[B3_OFF + n]


def pack_params(params):
    """Concatenate all six tiny parameter arrays into one padded f32 vector."""
    w1, b1, w2, b2, w3, b3 = params
    flat = jnp.concatenate([
        w1.reshape(-1), b1.reshape(-1),
        w2.reshape(-1), b2.reshape(-1),
        w3.reshape(-1), b3.reshape(-1),
    ]).astype(jnp.float32)
    return jnp.pad(flat, (0, N_PARAMS_PAD - N_PARAMS))


@functools.partial(jax.jit, static_argnames=("block_rows",))
def dqn_forward(x, packed_params, *, block_rows=512):
    """Forward pass matching DQN.forward. x: (B, 1) f32 -> (B, 4) f32."""
    B = x.shape[0]
    x_flat = x.reshape(-1).astype(jnp.float32)           # in_features == 1

    rows = max(1, pl.cdiv(B, LANES))                      # sublane rows needed
    tr = min(block_rows, _round_up(rows, SUBLANES))       # tile rows (multiple of 8)
    R = _round_up(rows, tr)                               # total rows (divisible by tr)
    Bp = R * LANES                                        # padded batch

    x_pad = jnp.zeros((Bp,), jnp.float32).at[:B].set(x_flat).reshape(R, LANES)

    out = pl.pallas_call(
        dqn_kernel,
        out_shape=jax.ShapeDtypeStruct((4, R, LANES), jnp.float32),
        grid=(R // tr,),
        in_specs=[
            # packed weights/biases: whole array, SMEM-resident across the grid
            pl.BlockSpec(memory_space=pltpu.MemorySpace.SMEM),
            # batch tile: lane-dense (tr, 128) block per grid step
            pl.BlockSpec((tr, LANES), lambda i: (i, 0)),
        ],
        out_specs=pl.BlockSpec((4, tr, LANES), lambda i: (0, i, 0)),
        compiler_params=pltpu.CompilerParams(
            dimension_semantics=("parallel",),            # batch tiles shard across TCs
            vmem_limit_bytes=32 * 1024 * 1024,            # tile footprint << limit everywhere
        ),
    )(packed_params, x_pad)

    # (4, R, 128) -> (4, Bp) -> drop padding -> (B, 4)
    return out.reshape(4, Bp)[:, :B].T


def init_params(key):
    """Deterministic init mirroring nn.Linear shapes.
    PyTorch stores weight as (out, in); we store the transpose (in, out)."""
    def linear(key, fan_in, fan_out):
        kw, kb = jax.random.split(key)
        bound = 1.0 / jnp.sqrt(float(fan_in))
        w = jax.random.uniform(kw, (fan_in, fan_out), jnp.float32, -bound, bound)
        b = jax.random.uniform(kb, (1, fan_out), jnp.float32, -bound, bound)
        return w, b

    k1, k2, k3 = jax.random.split(key, 3)
    w1, b1 = linear(k1, 1, 9)   # hl1: Linear(1, 9)
    w2, b2 = linear(k2, 9, 4)   # hl2: Linear(9, 4)
    w3, b3 = linear(k3, 4, 4)   # out: Linear(4, 4)
    return (w1, b1, w2, b2, w3, b3)


def dqn_reference(x, params):
    w1, b1, w2, b2, w3, b3 = params
    h1 = jnp.maximum(x @ w1 + b1, 0.0)
    h2 = jnp.maximum(h1 @ w2 + b2, 0.0)
    return h2 @ w3 + b3


if __name__ == "__main__":
    key = jax.random.PRNGKey(0)
    kp, kx1, kx2 = jax.random.split(key, 3)
    params = init_params(kp)
    packed = pack_params(params)

    # Small demo batch (matches the module's (B, 1) input).
    B = 8
    x = jax.random.uniform(kx1, (B, 1), jnp.float32)
    out = jax.block_until_ready(dqn_forward(x, packed))
    ref = dqn_reference(x, params)
    assert out.shape == (B, 4)
    assert jnp.allclose(out, ref, atol=1e-5, rtol=1e-5)

    # Larger batch with a small tile to exercise the multi-step pipelined grid.
    B2 = 2500
    x2 = jax.random.uniform(kx2, (B2, 1), jnp.float32)
    out2 = jax.block_until_ready(dqn_forward(x2, packed, block_rows=8))
    ref2 = dqn_reference(x2, params)
    assert out2.shape == (B2, 4)
    assert jnp.allclose(out2, ref2, atol=1e-5, rtol=1e-5)

    print("KERNEL_OK")
</pallas_src>

<mosaic_0001>
module attributes {stable_mosaic.version = 11 : i64} {
  func.func @dqn_kernel(%arg0: i32, %arg1: memref<128xf32, #tpu.memory_space<smem>>, %arg2: memref<8x128xf32, #tpu.memory_space<vmem>>, %arg3: memref<4x8x128xf32, #tpu.memory_space<vmem>>) attributes {dimension_semantics = [#tpu.dimension_semantics<parallel>], iteration_bounds = array<i64: 1>, scalar_prefetch = 0 : i64, scratch_operands = 0 : i64, tpu.core_type = #tpu.core_type<tc>, window_params = [{transform_indices = @transform_0, window_bounds = array<i64: 128>}, {transform_indices = @transform_1, window_bounds = array<i64: 8, 128>}, {transform_indices = @transform_2, window_bounds = array<i64: 4, 8, 128>}]} {
    %c0 = arith.constant 0 : index
    %c0_0 = arith.constant 0 : index
    %0 = vector.load %arg2[%c0, %c0_0] : memref<8x128xf32, #tpu.memory_space<vmem>>, vector<8x128xf32>
    %c0_1 = arith.constant 0 : index
    %1 = memref.load %arg1[%c0_1] : memref<128xf32, #tpu.memory_space<smem>>
    %2 = vector.broadcast %1 : f32 to vector<8x128xf32>
    %3 = arith.mulf %2, %0 : vector<8x128xf32>
    %c9 = arith.constant 9 : index
    %4 = memref.load %arg1[%c9] : memref<128xf32, #tpu.memory_space<smem>>
    %5 = vector.broadcast %4 : f32 to vector<8x128xf32>
    %6 = arith.addf %3, %5 : vector<8x128xf32>
    %cst = arith.constant 0.000000e+00 : f32
    %7 = vector.broadcast %cst : f32 to vector<8x128xf32>
    %8 = arith.maximumf %6, %7 : vector<8x128xf32>
    %c1 = arith.constant 1 : index
    %9 = memref.load %arg1[%c1] : memref<128xf32, #tpu.memory_space<smem>>
    %10 = vector.broadcast %9 : f32 to vector<8x128xf32>
    %11 = arith.mulf %10, %0 : vector<8x128xf32>
    %c10 = arith.constant 10 : index
    %12 = memref.load %arg1[%c10] : memref<128xf32, #tpu.memory_space<smem>>
    %13 = vector.broadcast %12 : f32 to vector<8x128xf32>
    %14 = arith.addf %11, %13 : vector<8x128xf32>
    %cst_2 = arith.constant 0.000000e+00 : f32
    %15 = vector.broadcast %cst_2 : f32 to vector<8x128xf32>
    %16 = arith.maximumf %14, %15 : vector<8x128xf32>
    %c2 = arith.constant 2 : index
    %17 = memref.load %arg1[%c2] : memref<128xf32, #tpu.memory_space<smem>>
    %18 = vector.broadcast %17 : f32 to vector<8x128xf32>
    %19 = arith.mulf %18, %0 : vector<8x128xf32>
    %c11 = arith.constant 11 : index
    %20 = memref.load %arg1[%c11] : memref<128xf32, #tpu.memory_space<smem>>
    %21 = vector.broadcast %20 : f32 to vector<8x128xf32>
    %22 = arith.addf %19, %21 : vector<8x128xf32>
    %cst_3 = arith.constant 0.000000e+00 : f32
    %23 = vector.broadcast %cst_3 : f32 to vector<8x128xf32>
    %24 = arith.maximumf %22, %23 : vector<8x128xf32>
    %c3 = arith.constant 3 : index
    %25 = memref.load %arg1[%c3] : memref<128xf32, #tpu.memory_space<smem>>
    %26 = vector.broadcast %25 : f32 to vector<8x128xf32>
    %27 = arith.mulf %26, %0 : vector<8x128xf32>
    %c12 = arith.constant 12 : index
    %28 = memref.load %arg1[%c12] : memref<128xf32, #tpu.memory_space<smem>>
    %29 = vector.broadcast %28 : f32 to vector<8x128xf32>
    %30 = arith.addf %27, %29 : vector<8x128xf32>
    %cst_4 = arith.constant 0.000000e+00 : f32
    %31 = vector.broadcast %cst_4 : f32 to vector<8x128xf32>
    %32 = arith.maximumf %30, %31 : vector<8x128xf32>
    %c4 = arith.constant 4 : index
    %33 = memref.load %arg1[%c4] : memref<128xf32, #tpu.memory_space<smem>>
    %34 = vector.broadcast %33 : f32 to vector<8x128xf32>
    %35 = arith.mulf %34, %0 : vector<8x128xf32>
    %c13 = arith.constant 13 : index
    %36 = memref.load %arg1[%c13] : memref<128xf32, #tpu.memory_space<smem>>
    %37 = vector.broadcast %36 : f32 to vector<8x128xf32>
    %38 = arith.addf %35, %37 : vector<8x128xf32>
    %cst_5 = arith.constant 0.000000e+00 : f32
    %39 = vector.broadcast %cst_5 : f32 to vector<8x128xf32>
    %40 = arith.maximumf %38, %39 : vector<8x128xf32>
    %c5 = arith.constant 5 : index
    %41 = memref.load %arg1[%c5] : memref<128xf32, #tpu.memory_space<smem>>
    %42 = vector.broadcast %41 : f32 to vector<8x128xf32>
    %43 = arith.mulf %42, %0 : vector<8x128xf32>
    %c14 = arith.constant 14 : index
    %44 = memref.load %arg1[%c14] : memref<128xf32, #tpu.memory_space<smem>>
    %45 = vector.broadcast %44 : f32 to vector<8x128xf32>
    %46 = arith.addf %43, %45 : vector<8x128xf32>
    %cst_6 = arith.constant 0.000000e+00 : f32
    %47 = vector.broadcast %cst_6 : f32 to vector<8x128xf32>
    %48 = arith.maximumf %46, %47 : vector<8x128xf32>
    %c6 = arith.constant 6 : index
    %49 = memref.load %arg1[%c6] : memref<128xf32, #tpu.memory_space<smem>>
    %50 = vector.broadcast %49 : f32 to vector<8x128xf32>
    %51 = arith.mulf %50, %0 : vector<8x128xf32>
    %c15 = arith.constant 15 : index
    %52 = memref.load %arg1[%c15] : memref<128xf32, #tpu.memory_space<smem>>
    %53 = vector.broadcast %52 : f32 to vector<8x128xf32>
    %54 = arith.addf %51, %53 : vector<8x128xf32>
    %cst_7 = arith.constant 0.000000e+00 : f32
    %55 = vector.broadcast %cst_7 : f32 to vector<8x128xf32>
    %56 = arith.maximumf %54, %55 : vector<8x128xf32>
    %c7 = arith.constant 7 : index
    %57 = memref.load %arg1[%c7] : memref<128xf32, #tpu.memory_space<smem>>
    %58 = vector.broadcast %57 : f32 to vector<8x128xf32>
    %59 = arith.mulf %58, %0 : vector<8x128xf32>
    %c16 = arith.constant 16 : index
    %60 = memref.load %arg1[%c16] : memref<128xf32, #tpu.memory_space<smem>>
    %61 = vector.broadcast %60 : f32 to vector<8x128xf32>
    %62 = arith.addf %59, %61 : vector<8x128xf32>
    %cst_8 = arith.constant 0.000000e+00 : f32
    %63 = vector.broadcast %cst_8 : f32 to vector<8x128xf32>
    %64 = arith.maximumf %62, %63 : vector<8x128xf32>
    %c8 = arith.constant 8 : index
    %65 = memref.load %arg1[%c8] : memref<128xf32, #tpu.memory_space<smem>>
    %66 = vector.broadcast %65 : f32 to vector<8x128xf32>
    %67 = arith.mulf %66, %0 : vector<8x128xf32>
    %c17 = arith.constant 17 : index
    %68 = memref.load %arg1[%c17] : memref<128xf32, #tpu.memory_space<smem>>
    %69 = vector.broadcast %68 : f32 to vector<8x128xf32>
    %70 = arith.addf %67, %69 : vector<8x128xf32>
    %cst_9 = arith.constant 0.000000e+00 : f32
    %71 = vector.broadcast %cst_9 : f32 to vector<8x128xf32>
    %72 = arith.maximumf %70, %71 : vector<8x128xf32>
    %c18 = arith.constant 18 : index
    %73 = memref.load %arg1[%c18] : memref<128xf32, #tpu.memory_space<smem>>
    %74 = vector.broadcast %73 : f32 to vector<8x128xf32>
    %75 = arith.mulf %74, %8 : vector<8x128xf32>
    %c22 = arith.constant 22 : index
    %76 = memref.load %arg1[%c22] : memref<128xf32, #tpu.memory_space<smem>>
    %77 = vector.broadcast %76 : f32 to vector<8x128xf32>
    %78 = arith.mulf %77, %16 : vector<8x128xf32>
    %79 = arith.addf %75, %78 : vector<8x128xf32>
    %c26 = arith.constant 26 : index
    %80 = memref.load %arg1[%c26] : memref<128xf32, #tpu.memory_space<smem>>
    %81 = vector.broadcast %80 : f32 to vector<8x128xf32>
    %82 = arith.mulf %81, %24 : vector<8x128xf32>
    %83 = arith.addf %79, %82 : vector<8x128xf32>
    %c30 = arith.constant 30 : index
    %84 = memref.load %arg1[%c30] : memref<128xf32, #tpu.memory_space<smem>>
    %85 = vector.broadcast %84 : f32 to vector<8x128xf32>
    %86 = arith.mulf %85, %32 : vector<8x128xf32>
    %87 = arith.addf %83, %86 : vector<8x128xf32>
    %c34 = arith.constant 34 : index
    %88 = memref.load %arg1[%c34] : memref<128xf32, #tpu.memory_space<smem>>
    %89 = vector.broadcast %88 : f32 to vector<8x128xf32>
    %90 = arith.mulf %89, %40 : vector<8x128xf32>
    %91 = arith.addf %87, %90 : vector<8x128xf32>
    %c38 = arith.constant 38 : index
    %92 = memref.load %arg1[%c38] : memref<128xf32, #tpu.memory_space<smem>>
    %93 = vector.broadcast %92 : f32 to vector<8x128xf32>
    %94 = arith.mulf %93, %48 : vector<8x128xf32>
    %95 = arith.addf %91, %94 : vector<8x128xf32>
    %c42 = arith.constant 42 : index
    %96 = memref.load %arg1[%c42] : memref<128xf32, #tpu.memory_space<smem>>
    %97 = vector.broadcast %96 : f32 to vector<8x128xf32>
    %98 = arith.mulf %97, %56 : vector<8x128xf32>
    %99 = arith.addf %95, %98 : vector<8x128xf32>
    %c46 = arith.constant 46 : index
    %100 = memref.load %arg1[%c46] : memref<128xf32, #tpu.memory_space<smem>>
    %101 = vector.broadcast %100 : f32 to vector<8x128xf32>
    %102 = arith.mulf %101, %64 : vector<8x128xf32>
    %103 = arith.addf %99, %102 : vector<8x128xf32>
    %c50 = arith.constant 50 : index
    %104 = memref.load %arg1[%c50] : memref<128xf32, #tpu.memory_space<smem>>
    %105 = vector.broadcast %104 : f32 to vector<8x128xf32>
    %106 = arith.mulf %105, %72 : vector<8x128xf32>
    %107 = arith.addf %103, %106 : vector<8x128xf32>
    %c54 = arith.constant 54 : index
    %108 = memref.load %arg1[%c54] : memref<128xf32, #tpu.memory_space<smem>>
    %109 = vector.broadcast %108 : f32 to vector<8x128xf32>
    %110 = arith.addf %107, %109 : vector<8x128xf32>
    %cst_10 = arith.constant 0.000000e+00 : f32
    %111 = vector.broadcast %cst_10 : f32 to vector<8x128xf32>
    %112 = arith.maximumf %110, %111 : vector<8x128xf32>
    %c19 = arith.constant 19 : index
    %113 = memref.load %arg1[%c19] : memref<128xf32, #tpu.memory_space<smem>>
    %114 = vector.broadcast %113 : f32 to vector<8x128xf32>
    %115 = arith.mulf %114, %8 : vector<8x128xf32>
    %c23 = arith.constant 23 : index
    %116 = memref.load %arg1[%c23] : memref<128xf32, #tpu.memory_space<smem>>
    %117 = vector.broadcast %116 : f32 to vector<8x128xf32>
    %118 = arith.mulf %117, %16 : vector<8x128xf32>
    %119 = arith.addf %115, %118 : vector<8x128xf32>
    %c27 = arith.constant 27 : index
    %120 = memref.load %arg1[%c27] : memref<128xf32, #tpu.memory_space<smem>>
    %121 = vector.broadcast %120 : f32 to vector<8x128xf32>
    %122 = arith.mulf %121, %24 : vector<8x128xf32>
    %123 = arith.addf %119, %122 : vector<8x128xf32>
    %c31 = arith.constant 31 : index
    %124 = memref.load %arg1[%c31] : memref<128xf32, #tpu.memory_space<smem>>
    %125 = vector.broadcast %124 : f32 to vector<8x128xf32>
    %126 = arith.mulf %125, %32 : vector<8x128xf32>
    %127 = arith.addf %123, %126 : vector<8x128xf32>
    %c35 = arith.constant 35 : index
    %128 = memref.load %arg1[%c35] : memref<128xf32, #tpu.memory_space<smem>>
    %129 = vector.broadcast %128 : f32 to vector<8x128xf32>
    %130 = arith.mulf %129, %40 : vector<8x128xf32>
    %131 = arith.addf %127, %130 : vector<8x128xf32>
    %c39 = arith.constant 39 : index
    %132 = memref.load %arg1[%c39] : memref<128xf32, #tpu.memory_space<smem>>
    %133 = vector.broadcast %132 : f32 to vector<8x128xf32>
    %134 = arith.mulf %133, %48 : vector<8x128xf32>
    %135 = arith.addf %131, %134 : vector<8x128xf32>
    %c43 = arith.constant 43 : index
    %136 = memref.load %arg1[%c43] : memref<128xf32, #tpu.memory_space<smem>>
    %137 = vector.broadcast %136 : f32 to vector<8x128xf32>
    %138 = arith.mulf %137, %56 : vector<8x128xf32>
    %139 = arith.addf %135, %138 : vector<8x128xf32>
    %c47 = arith.constant 47 : index
    %140 = memref.load %arg1[%c47] : memref<128xf32, #tpu.memory_space<smem>>
    %141 = vector.broadcast %140 : f32 to vector<8x128xf32>
    %142 = arith.mulf %141, %64 : vector<8x128xf32>
    %143 = arith.addf %139, %142 : vector<8x128xf32>
    %c51 = arith.constant 51 : index
    %144 = memref.load %arg1[%c51] : memref<128xf32, #tpu.memory_space<smem>>
    %145 = vector.broadcast %144 : f32 to vector<8x128xf32>
    %146 = arith.mulf %145, %72 : vector<8x128xf32>
    %147 = arith.addf %143, %146 : vector<8x128xf32>
    %c55 = arith.constant 55 : index
    %148 = memref.load %arg1[%c55] : memref<128xf32, #tpu.memory_space<smem>>
    %149 = vector.broadcast %148 : f32 to vector<8x128xf32>
    %150 = arith.addf %147, %149 : vector<8x128xf32>
    %cst_11 = arith.constant 0.000000e+00 : f32
    %151 = vector.broadcast %cst_11 : f32 to vector<8x128xf32>
    %152 = arith.maximumf %150, %151 : vector<8x128xf32>
    %c20 = arith.constant 20 : index
    %153 = memref.load %arg1[%c20] : memref<128xf32, #tpu.memory_space<smem>>
    %154 = vector.broadcast %153 : f32 to vector<8x128xf32>
    %155 = arith.mulf %154, %8 : vector<8x128xf32>
    %c24 = arith.constant 24 : index
    %156 = memref.load %arg1[%c24] : memref<128xf32, #tpu.memory_space<smem>>
    %157 = vector.broadcast %156 : f32 to vector<8x128xf32>
    %158 = arith.mulf %157, %16 : vector<8x128xf32>
    %159 = arith.addf %155, %158 : vector<8x128xf32>
    %c28 = arith.constant 28 : index
    %160 = memref.load %arg1[%c28] : memref<128xf32, #tpu.memory_space<smem>>
    %161 = vector.broadcast %160 : f32 to vector<8x128xf32>
    %162 = arith.mulf %161, %24 : vector<8x128xf32>
    %163 = arith.addf %159, %162 : vector<8x128xf32>
    %c32 = arith.constant 32 : index
    %164 = memref.load %arg1[%c32] : memref<128xf32, #tpu.memory_space<smem>>
    %165 = vector.broadcast %164 : f32 to vector<8x128xf32>
    %166 = arith.mulf %165, %32 : vector<8x128xf32>
    %167 = arith.addf %163, %166 : vector<8x128xf32>
    %c36 = arith.constant 36 : index
    %168 = memref.load %arg1[%c36] : memref<128xf32, #tpu.memory_space<smem>>
    %169 = vector.broadcast %168 : f32 to vector<8x128xf32>
    %170 = arith.mulf %169, %40 : vector<8x128xf32>
    %171 = arith.addf %167, %170 : vector<8x128xf32>
    %c40 = arith.constant 40 : index
    %172 = memref.load %arg1[%c40] : memref<128xf32, #tpu.memory_space<smem>>
    %173 = vector.broadcast %172 : f32 to vector<8x128xf32>
    %174 = arith.mulf %173, %48 : vector<8x128xf32>
    %175 = arith.addf %171, %174 : vector<8x128xf32>
    %c44 = arith.constant 44 : index
    %176 = memref.load %arg1[%c44] : memref<128xf32, #tpu.memory_space<smem>>
    %177 = vector.broadcast %176 : f32 to vector<8x128xf32>
    %178 = arith.mulf %177, %56 : vector<8x128xf32>
    %179 = arith.addf %175, %178 : vector<8x128xf32>
    %c48 = arith.constant 48 : index
    %180 = memref.load %arg1[%c48] : memref<128xf32, #tpu.memory_space<smem>>
    %181 = vector.broadcast %180 : f32 to vector<8x128xf32>
    %182 = arith.mulf %181, %64 : vector<8x128xf32>
    %183 = arith.addf %179, %182 : vector<8x128xf32>
    %c52 = arith.constant 52 : index
    %184 = memref.load %arg1[%c52] : memref<128xf32, #tpu.memory_space<smem>>
    %185 = vector.broadcast %184 : f32 to vector<8x128xf32>
    %186 = arith.mulf %185, %72 : vector<8x128xf32>
    %187 = arith.addf %183, %186 : vector<8x128xf32>
    %c56 = arith.constant 56 : index
    %188 = memref.load %arg1[%c56] : memref<128xf32, #tpu.memory_space<smem>>
    %189 = vector.broadcast %188 : f32 to vector<8x128xf32>
    %190 = arith.addf %187, %189 : vector<8x128xf32>
    %cst_12 = arith.constant 0.000000e+00 : f32
    %191 = vector.broadcast %cst_12 : f32 to vector<8x128xf32>
    %192 = arith.maximumf %190, %191 : vector<8x128xf32>
    %c21 = arith.constant 21 : index
    %193 = memref.load %arg1[%c21] : memref<128xf32, #tpu.memory_space<smem>>
    %194 = vector.broadcast %193 : f32 to vector<8x128xf32>
    %195 = arith.mulf %194, %8 : vector<8x128xf32>
    %c25 = arith.constant 25 : index
    %196 = memref.load %arg1[%c25] : memref<128xf32, #tpu.memory_space<smem>>
    %197 = vector.broadcast %196 : f32 to vector<8x128xf32>
    %198 = arith.mulf %197, %16 : vector<8x128xf32>
    %199 = arith.addf %195, %198 : vector<8x128xf32>
    %c29 = arith.constant 29 : index
    %200 = memref.load %arg1[%c29] : memref<128xf32, #tpu.memory_space<smem>>
    %201 = vector.broadcast %200 : f32 to vector<8x128xf32>
    %202 = arith.mulf %201, %24 : vector<8x128xf32>
    %203 = arith.addf %199, %202 : vector<8x128xf32>
    %c33 = arith.constant 33 : index
    %204 = memref.load %arg1[%c33] : memref<128xf32, #tpu.memory_space<smem>>
    %205 = vector.broadcast %204 : f32 to vector<8x128xf32>
    %206 = arith.mulf %205, %32 : vector<8x128xf32>
    %207 = arith.addf %203, %206 : vector<8x128xf32>
    %c37 = arith.constant 37 : index
    %208 = memref.load %arg1[%c37] : memref<128xf32, #tpu.memory_space<smem>>
    %209 = vector.broadcast %208 : f32 to vector<8x128xf32>
    %210 = arith.mulf %209, %40 : vector<8x128xf32>
    %211 = arith.addf %207, %210 : vector<8x128xf32>
    %c41 = arith.constant 41 : index
    %212 = memref.load %arg1[%c41] : memref<128xf32, #tpu.memory_space<smem>>
    %213 = vector.broadcast %212 : f32 to vector<8x128xf32>
    %214 = arith.mulf %213, %48 : vector<8x128xf32>
    %215 = arith.addf %211, %214 : vector<8x128xf32>
    %c45 = arith.constant 45 : index
    %216 = memref.load %arg1[%c45] : memref<128xf32, #tpu.memory_space<smem>>
    %217 = vector.broadcast %216 : f32 to vector<8x128xf32>
    %218 = arith.mulf %217, %56 : vector<8x128xf32>
    %219 = arith.addf %215, %218 : vector<8x128xf32>
    %c49 = arith.constant 49 : index
    %220 = memref.load %arg1[%c49] : memref<128xf32, #tpu.memory_space<smem>>
    %221 = vector.broadcast %220 : f32 to vector<8x128xf32>
    %222 = arith.mulf %221, %64 : vector<8x128xf32>
    %223 = arith.addf %219, %222 : vector<8x128xf32>
    %c53 = arith.constant 53 : index
    %224 = memref.load %arg1[%c53] : memref<128xf32, #tpu.memory_space<smem>>
    %225 = vector.broadcast %224 : f32 to vector<8x128xf32>
    %226 = arith.mulf %225, %72 : vector<8x128xf32>
    %227 = arith.addf %223, %226 : vector<8x128xf32>
    %c57 = arith.constant 57 : index
    %228 = memref.load %arg1[%c57] : memref<128xf32, #tpu.memory_space<smem>>
    %229 = vector.broadcast %228 : f32 to vector<8x128xf32>
    %230 = arith.addf %227, %229 : vector<8x128xf32>
    %cst_13 = arith.constant 0.000000e+00 : f32
    %231 = vector.broadcast %cst_13 : f32 to vector<8x128xf32>
    %232 = arith.maximumf %230, %231 : vector<8x128xf32>
    %c58 = arith.constant 58 : index
    %233 = memref.load %arg1[%c58] : memref<128xf32, #tpu.memory_space<smem>>
    %234 = vector.broadcast %233 : f32 to vector<8x128xf32>
    %235 = arith.mulf %234, %112 : vector<8x128xf32>
    %c62 = arith.constant 62 : index
    %236 = memref.load %arg1[%c62] : memref<128xf32, #tpu.memory_space<smem>>
    %237 = vector.broadcast %236 : f32 to vector<8x128xf32>
    %238 = arith.mulf %237, %152 : vector<8x128xf32>
    %239 = arith.addf %235, %238 : vector<8x128xf32>
    %c66 = arith.constant 66 : index
    %240 = memref.load %arg1[%c66] : memref<128xf32, #tpu.memory_space<smem>>
    %241 = vector.broadcast %240 : f32 to vector<8x128xf32>
    %242 = arith.mulf %241, %192 : vector<8x128xf32>
    %243 = arith.addf %239, %242 : vector<8x128xf32>
    %c70 = arith.constant 70 : index
    %244 = memref.load %arg1[%c70] : memref<128xf32, #tpu.memory_space<smem>>
    %245 = vector.broadcast %244 : f32 to vector<8x128xf32>
    %246 = arith.mulf %245, %232 : vector<8x128xf32>
    %247 = arith.addf %243, %246 : vector<8x128xf32>
    %c74 = arith.constant 74 : index
    %248 = memref.load %arg1[%c74] : memref<128xf32, #tpu.memory_space<smem>>
    %249 = vector.broadcast %248 : f32 to vector<8x128xf32>
    %250 = arith.addf %247, %249 : vector<8x128xf32>
    %c0_14 = arith.constant 0 : index
    %c0_15 = arith.constant 0 : index
    %c0_16 = arith.constant 0 : index
    %251 = vector.load %arg3[%c0_14, %c0_15, %c0_16] : memref<4x8x128xf32, #tpu.memory_space<vmem>>, vector<1x8x128xf32>
    %252 = vector.shape_cast %251 : vector<1x8x128xf32> to vector<8x128xf32>
    %253 = vector.shape_cast %250 : vector<8x128xf32> to vector<1x8x128xf32>
    tpu.vector_store %arg3[%c0_14, %c0_15, %c0_16], %253 {strides = array<i32>} : memref<4x8x128xf32, #tpu.memory_space<vmem>>, vector<1x8x128xf32>,
    %c59 = arith.constant 59 : index
    %254 = memref.load %arg1[%c59] : memref<128xf32, #tpu.memory_space<smem>>
    %255 = vector.broadcast %254 : f32 to vector<8x128xf32>
    %256 = arith.mulf %255, %112 : vector<8x128xf32>
    %c63 = arith.constant 63 : index
    %257 = memref.load %arg1[%c63] : memref<128xf32, #tpu.memory_space<smem>>
    %258 = vector.broadcast %257 : f32 to vector<8x128xf32>
    %259 = arith.mulf %258, %152 : vector<8x128xf32>
    %260 = arith.addf %256, %259 : vector<8x128xf32>
    %c67 = arith.constant 67 : index
    %261 = memref.load %arg1[%c67] : memref<128xf32, #tpu.memory_space<smem>>
    %262 = vector.broadcast %261 : f32 to vector<8x128xf32>
    %263 = arith.mulf %262, %192 : vector<8x128xf32>
    %264 = arith.addf %260, %263 : vector<8x128xf32>
    %c71 = arith.constant 71 : index
    %265 = memref.load %arg1[%c71] : memref<128xf32, #tpu.memory_space<smem>>
    %266 = vector.broadcast %265 : f32 to vector<8x128xf32>
    %267 = arith.mulf %266, %232 : vector<8x128xf32>
    %268 = arith.addf %264, %267 : vector<8x128xf32>
    %c75 = arith.constant 75 : index
    %269 = memref.load %arg1[%c75] : memref<128xf32, #tpu.memory_space<smem>>
    %270 = vector.broadcast %269 : f32 to vector<8x128xf32>
    %271 = arith.addf %268, %270 : vector<8x128xf32>
    %c1_17 = arith.constant 1 : index
    %c0_18 = arith.constant 0 : index
    %c0_19 = arith.constant 0 : index
    %272 = vector.load %arg3[%c1_17, %c0_18, %c0_19] : memref<4x8x128xf32, #tpu.memory_space<vmem>>, vector<1x8x128xf32>
    %273 = vector.shape_cast %272 : vector<1x8x128xf32> to vector<8x128xf32>
    %274 = vector.shape_cast %271 : vector<8x128xf32> to vector<1x8x128xf32>
    tpu.vector_store %arg3[%c1_17, %c0_18, %c0_19], %274 {strides = array<i32>} : memref<4x8x128xf32, #tpu.memory_space<vmem>>, vector<1x8x128xf32>,
    %c60 = arith.constant 60 : index
    %275 = memref.load %arg1[%c60] : memref<128xf32, #tpu.memory_space<smem>>
    %276 = vector.broadcast %275 : f32 to vector<8x128xf32>
    %277 = arith.mulf %276, %112 : vector<8x128xf32>
    %c64 = arith.constant 64 : index
    %278 = memref.load %arg1[%c64] : memref<128xf32, #tpu.memory_space<smem>>
    %279 = vector.broadcast %278 : f32 to vector<8x128xf32>
    %280 = arith.mulf %279, %152 : vector<8x128xf32>
    %281 = arith.addf %277, %280 : vector<8x128xf32>
    %c68 = arith.constant 68 : index
    %282 = memref.load %arg1[%c68] : memref<128xf32, #tpu.memory_space<smem>>
    %283 = vector.broadcast %282 : f32 to vector<8x128xf32>
    %284 = arith.mulf %283, %192 : vector<8x128xf32>
    %285 = arith.addf %281, %284 : vector<8x128xf32>
    %c72 = arith.constant 72 : index
    %286 = memref.load %arg1[%c72] : memref<128xf32, #tpu.memory_space<smem>>
    %287 = vector.broadcast %286 : f32 to vector<8x128xf32>
    %288 = arith.mulf %287, %232 : vector<8x128xf32>
    %289 = arith.addf %285, %288 : vector<8x128xf32>
    %c76 = arith.constant 76 : index
    %290 = memref.load %arg1[%c76] : memref<128xf32, #tpu.memory_space<smem>>
    %291 = vector.broadcast %290 : f32 to vector<8x128xf32>
    %292 = arith.addf %289, %291 : vector<8x128xf32>
    %c2_20 = arith.constant 2 : index
    %c0_21 = arith.constant 0 : index
    %c0_22 = arith.constant 0 : index
    %293 = vector.load %arg3[%c2_20, %c0_21, %c0_22] : memref<4x8x128xf32, #tpu.memory_space<vmem>>, vector<1x8x128xf32>
    %294 = vector.shape_cast %293 : vector<1x8x128xf32> to vector<8x128xf32>
    %295 = vector.shape_cast %292 : vector<8x128xf32> to vector<1x8x128xf32>
    tpu.vector_store %arg3[%c2_20, %c0_21, %c0_22], %295 {strides = array<i32>} : memref<4x8x128xf32, #tpu.memory_space<vmem>>, vector<1x8x128xf32>,
    %c61 = arith.constant 61 : index
    %296 = memref.load %arg1[%c61] : memref<128xf32, #tpu.memory_space<smem>>
    %297 = vector.broadcast %296 : f32 to vector<8x128xf32>
    %298 = arith.mulf %297, %112 : vector<8x128xf32>
    %c65 = arith.constant 65 : index
    %299 = memref.load %arg1[%c65] : memref<128xf32, #tpu.memory_space<smem>>
    %300 = vector.broadcast %299 : f32 to vector<8x128xf32>
    %301 = arith.mulf %300, %152 : vector<8x128xf32>
    %302 = arith.addf %298, %301 : vector<8x128xf32>
    %c69 = arith.constant 69 : index
    %303 = memref.load %arg1[%c69] : memref<128xf32, #tpu.memory_space<smem>>
    %304 = vector.broadcast %303 : f32 to vector<8x128xf32>
    %305 = arith.mulf %304, %192 : vector<8x128xf32>
    %306 = arith.addf %302, %305 : vector<8x128xf32>
    %c73 = arith.constant 73 : index
    %307 = memref.load %arg1[%c73] : memref<128xf32, #tpu.memory_space<smem>>
    %308 = vector.broadcast %307 : f32 to vector<8x128xf32>
    %309 = arith.mulf %308, %232 : vector<8x128xf32>
    %310 = arith.addf %306, %309 : vector<8x128xf32>
    %c77 = arith.constant 77 : index
    %311 = memref.load %arg1[%c77] : memref<128xf32, #tpu.memory_space<smem>>
    %312 = vector.broadcast %311 : f32 to vector<8x128xf32>
    %313 = arith.addf %310, %312 : vector<8x128xf32>
    %c3_23 = arith.constant 3 : index
    %c0_24 = arith.constant 0 : index
    %c0_25 = arith.constant 0 : index
    %314 = vector.load %arg3[%c3_23, %c0_24, %c0_25] : memref<4x8x128xf32, #tpu.memory_space<vmem>>, vector<1x8x128xf32>
    %315 = vector.shape_cast %314 : vector<1x8x128xf32> to vector<8x128xf32>
    %316 = vector.shape_cast %313 : vector<8x128xf32> to vector<1x8x128xf32>
    tpu.vector_store %arg3[%c3_23, %c0_24, %c0_25], %316 {strides = array<i32>} : memref<4x8x128xf32, #tpu.memory_space<vmem>>, vector<1x8x128xf32>,
    return
  }
  func.func @transform_0(%arg0: i32) -> i32 {
    %c0_i32 = arith.constant 0 : i32
    %c0_i32_0 = arith.constant 0 : i32
    return %c0_i32 : i32
  }
  func.func @transform_1(%arg0: i32) -> (i32, i32) {
    %c0_i32 = arith.constant 0 : i32
    %c0_i32_0 = arith.constant 0 : i32
    return %arg0, %c0_i32 : i32, i32
  }
  func.func @transform_2(%arg0: i32) -> (i32, i32, i32) {
    %c0_i32 = arith.constant 0 : i32
    %c0_i32_0 = arith.constant 0 : i32
    %c0_i32_1 = arith.constant 0 : i32
    return %c0_i32, %arg0, %c0_i32_0 : i32, i32, i32
  }
}

</mosaic_0001>

<bundles_post_ra>
// kernel: dqn_forward.1
= control target key start
LH: loop header
LB: loop body
LE: loop exit
PB: predicated region body
PF: predicated region fallthrough
CT: control target
= control target key end

     0   :  { %7 = vsyncpa [#allocation3], 0  ;;  %s423_s12 = smov [#allocation2]   ;;  %s663_s0 = inlined_call_operand.vmem [shape: f32[128], index: 0, kind: input, shape index: {}]   ;;  %s664_s1 = inlined_call_operand.vmem [shape: f32[8,128], index: 1, kind: input, shape index: {}]   ;;  %s665_s2 = inlined_call_operand.vmem [shape: f32[4,8,128], index: 2, kind: output, shape index: {}]  }
   0x1   :  { %s13_s11 = sshll.u32 %s663_s0, 4  ;;  %s14_s11 = int_to_ptr.vmem [resolvable:$true] %s13_s11 }
   0x2   :  { %16 = dma.vmem_to_smem %s14_s11, 16, %s423_s12, [#allocation3]  }
   0x3   :  { %421 = dma.done.wait [#allocation3], 16  }
   0x4   :  { %422 = vsyncadd [#allocation3], 4294967280 }
   0x5   :  { %23 = sfence }
   0x6   :  { %s25_s13 = sld [smem:[#allocation2]]  ;;  %v449_v0 = vld [vmem:[%s664_s1] sm:$0xff] }
   0x7   :  { %s328_s14 = sld [smem:[#allocation2 + $0x9]] }
   0x8   :  { %s329_s15 = sld [smem:[#allocation2 + $0x1]] }
   0x9   :  { %s330_s16 = sld [smem:[#allocation2 + $0xa]] }
   0xa   :  { %s331_s17 = sld [smem:[#allocation2 + $0x2]] }
   0xb   :  { %s332_s18 = sld [smem:[#allocation2 + $0xb]] }
   0xc   :  { %s333_s19 = sld [smem:[#allocation2 + $0x3]]  ;;  %v26_v1 = vstv %s25_s13 }
   0xd   :  { %s334_s20 = sld [smem:[#allocation2 + $0xc]]  ;;  %v27_v4 = vmul.f32 %v26_v1, %v449_v0  ;;  %v29_v6 = vstv %s328_s14 }
   0xe   :  { %s442_s21 = sld [smem:[#allocation2 + $0x4]]  ;;  %v33_v2 = vstv %s329_s15 }
   0xf   :  { %s444_s22 = sld [smem:[#allocation2 + $0xd]]  ;;  %v34_v7 = vmul.f32 %v33_v2, %v449_v0  ;;  %v36_v8 = vstv %s330_s16  ;;  %v30_v12 = vadd.f32 %v29_v6, %v27_v4 }
  0x10   :  { %s451_s24 = sld [smem:[#allocation2 + $0x5]]  ;;  %v40_v3 = vstv %s331_s17 }
  0x11   :  { %s453_s25 = sld [smem:[#allocation2 + $0xe]]  ;;  %v41_v9 = vmul.f32 %v40_v3, %v449_v0  ;;  %v43_v10 = vstv %s332_s18  ;;  %v37_v14 = vadd.f32 %v36_v8, %v34_v7  ;;  %v472_v18 = vmax.f32 %v30_v12, 0.0 }
  0x12   :  { %s455_s26 = sld [smem:[#allocation2 + $0x6]]  ;;  %v47_v5 = vstv %s333_s19 }
  0x13   :  { %s458_s27 = sld [smem:[#allocation2 + $0xf]]  ;;  %v48_v11 = vmul.f32 %v47_v5, %v449_v0  ;;  %v50_v13 = vstv %s334_s20  ;;  %v44_v16 = vadd.f32 %v43_v10, %v41_v9  ;;  %v477_v20 = vmax.f32 %v37_v14, 0.0 }
  0x14   :  { %s461_s1 = sld [smem:[#allocation2 + $0x7]]  ;;  %v54_v15 = vstv %s442_s21 }
  0x15   :  { %s464_s28 = sld [smem:[#allocation2 + $0x10]]  ;;  %v51_v17 = vadd.f32 %v50_v13, %v48_v11  ;;  %v55_v19 = vmul.f32 %v54_v15, %v449_v0  ;;  %v57_v21 = vstv %s444_s22  ;;  %v483_v23 = vmax.f32 %v44_v16, 0.0 }
  0x16   :  { %s467_s29 = sld [smem:[#allocation2 + $0x8]]  ;;  %v61_v22 = vstv %s451_s24 }
  0x17   :  { %s469_s30 = sld [smem:[#allocation2 + $0x11]]  ;;  %v487_v24 = vmax.f32 %v51_v17, 0.0  ;;  %v58_v27 = vadd.f32 %v57_v21, %v55_v19  ;;  %v62_v28 = vmul.f32 %v61_v22, %v449_v0  ;;  %v64_v31 = vstv %s453_s25 }
  0x18   :  { %s345_s3 = sld [smem:[#allocation2 + $0x12]]  ;;  %v68_v25 = vstv %s455_s26 }
  0x19   :  { %s346_s4 = sld [smem:[#allocation2 + $0x16]]  ;;  %v69_v34 = vmul.f32 %v68_v25, %v449_v0  ;;  %v71_v37 = vstv %s458_s27  ;;  %v506_v39 = vmax.f32 %v58_v27, 0.0  ;;  %v65_v40 = vadd.f32 %v64_v31, %v62_v28 }
  0x1a   :  { %s347_s5 = sld [smem:[#allocation2 + $0x1a]]  ;;  %v75_v41 = vstv %s461_s1 }
  0x1b   :  { %s475_s6 = sld [smem:[#allocation2 + $0x1e]]  ;;  %v72_v45 = vadd.f32 %v71_v37, %v69_v34  ;;  %v76_v46 = vmul.f32 %v75_v41, %v449_v0  ;;  %v515_v48 = vmax.f32 %v65_v40, 0.0  ;;  %v78_v49 = vstv %s464_s28 }
  0x1c   :  { %s481_s7 = sld [smem:[#allocation2 + $0x22]]  ;;  %v82_v47 = vstv %s467_s29 }
  0x1d   :  { %s485_s8 = sld [smem:[#allocation2 + $0x26]]  ;;  %v524_v54 = vmax.f32 %v72_v45, 0.0  ;;  %v83_v55 = vmul.f32 %v82_v47, %v449_v0  ;;  %v79_v58 = vadd.f32 %v78_v49, %v76_v46  ;;  %v85_v59 = vstv %s469_s30 }
  0x1e   :  { %v89_v26 = vstv %s345_s3  ;;  %s490_s9 = sld [smem:[#allocation2 + $0x2a]] }
  0x1f   :  { %v90_v29 = vmul.f32 %v89_v26, %v472_v18  ;;  %v92_v30 = vstv %s346_s4  ;;  %s494_s10 = sld [smem:[#allocation2 + $0x2e]]  ;;  %v86_v6 = vadd.f32 %v85_v59, %v83_v55  ;;  %v543_v10 = vmax.f32 %v79_v58, 0.0 }
  0x20   :  { %v93_v32 = vmul.f32 %v92_v30, %v477_v20  ;;  %v96_v33 = vstv %s347_s5  ;;  %s498_s11 = sld [smem:[#allocation2 + $0x32]] }
  0x21   :  { %v97_v35 = vmul.f32 %v96_v33, %v483_v23  ;;  %v100_v36 = vstv %s475_s6  ;;  %s503_s12 = sld [smem:[#allocation2 + $0x36]]  ;;  %v551_v17 = vmax.f32 %v86_v6, 0.0 }
  0x22   :  { %v94_v38 = vadd.f32 %v93_v32, %v90_v29  ;;  %s355_s13 = sld [smem:[#allocation2 + $0x13]]  ;;  %v101_v42 = vmul.f32 %v100_v36, %v487_v24  ;;  %v104_v44 = vstv %s481_s7 }
  0x23   :  { %s356_s14 = sld [smem:[#allocation2 + $0x17]]  ;;  %v105_v51 = vmul.f32 %v104_v44, %v506_v39  ;;  %v108_v52 = vstv %s485_s8 }
  0x24   :  { %v98_v43 = vadd.f32 %v97_v35, %v94_v38  ;;  %s357_s15 = sld [smem:[#allocation2 + $0x1b]]  ;;  %v109_v63 = vmul.f32 %v108_v52, %v515_v48  ;;  %v112_v2 = vstv %s490_s9 }
  0x25   :  { %s358_s16 = sld [smem:[#allocation2 + $0x1f]]  ;;  %v113_v12 = vmul.f32 %v112_v2, %v524_v54  ;;  %v116_v14 = vstv %s494_s10 }
  0x26   :  { %s513_s17 = sld [smem:[#allocation2 + $0x23]]  ;;  %v102_v50 = vadd.f32 %v101_v42, %v98_v43  ;;  %v117_v27 = vmul.f32 %v116_v14, %v543_v10  ;;  %v120_v30 = vstv %s498_s11 }
  0x27   :  { %s519_s18 = sld [smem:[#allocation2 + $0x27]]  ;;  %v121_v44 = vmul.f32 %v120_v30, %v551_v17 }
  0x28   :  { %v128_v53 = vstv %s355_s13  ;;  %s522_s19 = sld [smem:[#allocation2 + $0x2b]]  ;;  %v106_v62 = vadd.f32 %v105_v51, %v102_v50 }
  0x29   :  { %v129_v56 = vmul.f32 %v128_v53, %v472_v18  ;;  %v131_v57 = vstv %s356_s14  ;;  %s528_s20 = sld [smem:[#allocation2 + $0x2f]] }
  0x2a   :  { %v132_v60 = vmul.f32 %v131_v57, %v477_v20  ;;  %v135_v61 = vstv %s357_s15  ;;  %s532_s21 = sld [smem:[#allocation2 + $0x33]]  ;;  %v110_v11 = vadd.f32 %v109_v63, %v106_v62 }
  0x2b   :  { %v136_v1 = vmul.f32 %v135_v61, %v483_v23  ;;  %v139_v0 = vstv %s358_s16  ;;  %s536_s22 = sld [smem:[#allocation2 + $0x37]] }
  0x2c   :  { %v133_v3 = vadd.f32 %v132_v60, %v129_v56  ;;  %v140_v4 = vmul.f32 %v139_v0, %v487_v24  ;;  %v143_v5 = vstv %s513_s17  ;;  %s365_s23 = sld [smem:[#allocation2 + $0x14]]  ;;  %v114_v26 = vadd.f32 %v113_v12, %v110_v11 }
  0x2d   :  { %v147_v7 = vstv %s519_s18  ;;  %s366_s0 = sld [smem:[#allocation2 + $0x18]]  ;;  %v144_v9 = vmul.f32 %v143_v5, %v506_v39  ;;  %v124_v56 = vstv %s503_s12 }
  0x2e   :  { %v137_v8 = vadd.f32 %v136_v1, %v133_v3  ;;  %s367_s24 = sld [smem:[#allocation2 + $0x1c]]  ;;  %v151_v13 = vstv %s522_s19  ;;  %v148_v16 = vmul.f32 %v147_v7, %v515_v48  ;;  %v118_v43 = vadd.f32 %v117_v27, %v114_v26 }
  0x2f   :  { %s368_s25 = sld [smem:[#allocation2 + $0x20]]  ;;  %v152_v21 = vmul.f32 %v151_v13, %v524_v54  ;;  %v155_v22 = vstv %s528_s20 }
  0x30   :  { %v141_v15 = vadd.f32 %v140_v4, %v137_v8  ;;  %s549_s26 = sld [smem:[#allocation2 + $0x24]]  ;;  %v156_v34 = vmul.f32 %v155_v22, %v543_v10  ;;  %v159_v35 = vstv %s532_s21  ;;  %v122_v55 = vadd.f32 %v121_v44, %v118_v43 }
  0x31   :  { %s553_s27 = sld [smem:[#allocation2 + $0x28]]  ;;  %v160_v50 = vmul.f32 %v159_v35, %v551_v17  ;;  %v163_v63 = vstv %s536_s22 }
  0x32   :  { %v145_v19 = vadd.f32 %v144_v9, %v141_v15  ;;  %v167_v25 = vstv %s365_s23  ;;  %s557_s1 = sld [smem:[#allocation2 + $0x2c]] }
  0x33   :  { %v168_v28 = vmul.f32 %v167_v25, %v472_v18  ;;  %v170_v29 = vstv %s366_s0  ;;  %s561_s28 = sld [smem:[#allocation2 + $0x30]] }
  0x34   :  { %v149_v31 = vadd.f32 %v148_v16, %v145_v19  ;;  %v171_v32 = vmul.f32 %v170_v29, %v477_v20  ;;  %v174_v33 = vstv %s367_s24  ;;  %s565_s29 = sld [smem:[#allocation2 + $0x34]] }
  0x35   :  { %v175_v36 = vmul.f32 %v174_v33, %v483_v23  ;;  %v178_v37 = vstv %s368_s25  ;;  %s570_s30 = sld [smem:[#allocation2 + $0x38]] }
  0x36   :  { %v153_v38 = vadd.f32 %v152_v21, %v149_v31  ;;  %v172_v40 = vadd.f32 %v171_v32, %v168_v28  ;;  %v179_v41 = vmul.f32 %v178_v37, %v487_v24  ;;  %v182_v42 = vstv %s549_s26  ;;  %s375_s3 = sld [smem:[#allocation2 + $0x15]] }
  0x37   :  { %v186_v45 = vstv %s553_s27  ;;  %s376_s4 = sld [smem:[#allocation2 + $0x19]]  ;;  %v183_v47 = vmul.f32 %v182_v42, %v506_v39 }
  0x38   :  { %v176_v46 = vadd.f32 %v175_v36, %v172_v40  ;;  %s377_s5 = sld [smem:[#allocation2 + $0x1d]]  ;;  %v157_v49 = vadd.f32 %v156_v34, %v153_v38  ;;  %v190_v51 = vstv %s557_s1  ;;  %v187_v53 = vmul.f32 %v186_v45, %v515_v48 }
  0x39   :  { %s378_s6 = sld [smem:[#allocation2 + $0x21]]  ;;  %v194_v57 = vstv %s561_s28  ;;  %v191_v59 = vmul.f32 %v190_v51, %v524_v54 }
  0x3a   :  { %v180_v52 = vadd.f32 %v179_v41, %v176_v46  ;;  %s580_s7 = sld [smem:[#allocation2 + $0x25]]  ;;  %v198_v60 = vstv %s565_s29  ;;  %v161_v62 = vadd.f32 %v160_v50, %v157_v49  ;;  %v195_v3 = vmul.f32 %v194_v57, %v543_v10 }
  0x3b   :  { %s584_s8 = sld [smem:[#allocation2 + $0x29]]  ;;  %v199_v6 = vmul.f32 %v198_v60, %v551_v17  ;;  %v202_v19 = vstv %s570_s30 }
  0x3c   :  { %v184_v58 = vadd.f32 %v183_v47, %v180_v52  ;;  %v206_v61 = vstv %s375_s3  ;;  %s588_s9 = sld [smem:[#allocation2 + $0x2d]]  ;;  %v164_v13 = vadd.f32 %v163_v63, %v161_v62 }
  0x3d   :  { %v207_v1 = vmul.f32 %v206_v61, %v472_v18  ;;  %v209_v0 = vstv %s376_s4  ;;  %s592_s10 = sld [smem:[#allocation2 + $0x31]] }
  0x3e   :  { %v188_v2 = vadd.f32 %v187_v53, %v184_v58  ;;  %v210_v4 = vmul.f32 %v209_v0, %v477_v20  ;;  %v213_v5 = vstv %s377_s5  ;;  %s596_s11 = sld [smem:[#allocation2 + $0x35]]  ;;  %v125_v20 = vadd.f32 %v124_v56, %v122_v55 }
  0x3f   :  { %v214_v7 = vmul.f32 %v213_v5, %v483_v23  ;;  %v217_v8 = vstv %s378_s6  ;;  %s600_s12 = sld [smem:[#allocation2 + $0x39]]  ;;  %v619_v27 = vmax.f32 %v164_v13, 0.0 }
  0x40   :  { %v192_v18 = vadd.f32 %v191_v59, %v188_v2  ;;  %v211_v9 = vadd.f32 %v210_v4, %v207_v1  ;;  %v218_v11 = vmul.f32 %v217_v8, %v487_v24  ;;  %v221_v12 = vstv %s580_s7  ;;  %s604_s13 = sld [smem:[#allocation2 + $0x3a]] }
  0x41   :  { %v225_v14 = vstv %s584_s8  ;;  %s386_s14 = sld [smem:[#allocation2 + $0x3e]]  ;;  %v222_v23 = vmul.f32 %v221_v12, %v506_v39  ;;  %v617_v26 = vmax.f32 %v125_v20, 0.0 }
  0x42   :  { %v196_v15 = vadd.f32 %v195_v3, %v192_v18  ;;  %v215_v16 = vadd.f32 %v214_v7, %v211_v9  ;;  %s608_s15 = sld [smem:[#allocation2 + $0x42]]  ;;  %v229_v21 = vstv %s588_s9  ;;  %v226_v25 = vmul.f32 %v225_v14, %v515_v48 }
  0x43   :  { %s612_s16 = sld [smem:[#allocation2 + $0x46]]  ;;  %v233_v28 = vstv %s592_s10  ;;  %v230_v30 = vmul.f32 %v229_v21, %v524_v54 }
  0x44   :  { %v200_v24 = vadd.f32 %v199_v6, %v196_v15  ;;  %v219_v22 = vadd.f32 %v218_v11, %v215_v16  ;;  %s615_s17 = sld [smem:[#allocation2 + $0x4a]]  ;;  %v237_v32 = vstv %s596_s11  ;;  %v234_v34 = vmul.f32 %v233_v28, %v543_v10 }
  0x45   :  { %s390_s18 = sld [smem:[#allocation2 + $0x3b]]  ;;  %v238_v54 = vmul.f32 %v237_v32, %v551_v17  ;;  %v241_v43 = vstv %s600_s12 }
  0x46   :  { %v203_v39 = vadd.f32 %v202_v19, %v200_v24  ;;  %v223_v29 = vadd.f32 %v222_v23, %v219_v22  ;;  %v245_v31 = vstv %s604_s13  ;;  %s391_s19 = sld [smem:[#allocation2 + $0x3f]] }
  0x47   :  { %v248_v33 = vstv %s386_s14  ;;  %s392_s20 = sld [smem:[#allocation2 + $0x43]]  ;;  %v246_v36 = vmul.f32 %v245_v31, %v617_v26 }
  0x48   :  { %v227_v48 = vadd.f32 %v226_v25, %v223_v29  ;;  %s626_s21 = sld [smem:[#allocation2 + $0x47]]  ;;  %v204_v35 = vmax.f32 %v203_v39, 0.0  ;;  %v249_v37 = vmul.f32 %v248_v33, %v619_v27  ;;  %v252_v40 = vstv %s608_s15 }
  0x49   :  { %s630_s22 = sld [smem:[#allocation2 + $0x4b]]  ;;  %v256_v53 = vstv %s612_s16 }
  0x4a   :  { %v231_v38 = vadd.f32 %v230_v30, %v227_v48  ;;  %s396_s23 = sld [smem:[#allocation2 + $0x3c]]  ;;  %v250_v45 = vadd.f32 %v249_v37, %v246_v36  ;;  %v253_v46 = vmul.f32 %v252_v40, %v204_v35  ;;  %v260_v6 = vstv %s615_s17 }
  0x4b   :  { %v264_v41 = vstv %s390_s18  ;;  %s397_s0 = sld [smem:[#allocation2 + $0x40]] }
  0x4c   :  { %v235_v42 = vadd.f32 %v234_v34, %v231_v38  ;;  %v265_v10 = vmul.f32 %v264_v41, %v617_v26  ;;  %v267_v44 = vstv %s391_s19  ;;  %s398_s24 = sld [smem:[#allocation2 + $0x44]]  ;;  %v254_v56 = vadd.f32 %v253_v46, %v250_v45 }
  0x4d   :  { %v268_v47 = vmul.f32 %v267_v44, %v619_v27  ;;  %v271_v49 = vstv %s392_s20  ;;  %s399_s25 = sld [smem:[#allocation2 + $0x48]] }
  0x4e   :  { %v239_v50 = vadd.f32 %v238_v54, %v235_v42  ;;  %v272_v17 = vmul.f32 %v271_v49, %v204_v35  ;;  %s637_s26 = sld [smem:[#allocation2 + $0x4c]]  ;;  %v275_v57 = vstv %s626_s21 }
  0x4f   :  { %v269_v51 = vadd.f32 %v268_v47, %v265_v10  ;;  %s402_s27 = sld [smem:[#allocation2 + $0x3d]]  ;;  %v279_v7 = vstv %s630_s22 }
  0x50   :  { %v242_v52 = vadd.f32 %v241_v43, %v239_v50  ;;  %v284_v55 = vstv %s396_s23  ;;  %s640_s1 = sld [smem:[#allocation2 + $0x41]] }
  0x51   :  { %v285_v58 = vmul.f32 %v284_v55, %v617_v26  ;;  %v287_v59 = vstv %s397_s0  ;;  %s404_s28 = sld [smem:[#allocation2 + $0x45]]  ;;  %v273_v61 = vadd.f32 %v272_v17, %v269_v51 }
  0x52   :  { %v243_v60 = vmax.f32 %v242_v52, 0.0  ;;  %v288_v62 = vmul.f32 %v287_v59, %v619_v27  ;;  %v291_v63 = vstv %s398_s24  ;;  %s405_s29 = sld [smem:[#allocation2 + $0x49]] }
  0x53   :  { %v292_v1 = vmul.f32 %v291_v63, %v204_v35  ;;  %v295_v0 = vstv %s399_s25  ;;  %s406_s30 = sld [smem:[#allocation2 + $0x4d]] }
  0x54   :  { %v257_v2 = vmul.f32 %v256_v53, %v243_v60  ;;  %v276_v3 = vmul.f32 %v275_v57, %v243_v60  ;;  %v289_v4 = vadd.f32 %v288_v62, %v285_v58  ;;  %v296_v5 = vmul.f32 %v295_v0, %v243_v60 }
  0x55   :  { %v304_v8 = vstv %s402_s27  ;;  %v299_v20 = vstv %s637_s26 }
  0x56   :  { %v258_v18 = vadd.f32 %v257_v2, %v254_v56  ;;  %v277_v9 = vadd.f32 %v276_v3, %v273_v61  ;;  %v293_v11 = vadd.f32 %v292_v1, %v289_v4  ;;  %v305_v12 = vmul.f32 %v304_v8, %v617_v26 }
  0x57   :  { %v307_v13 = vstv %s640_s1  ;;  %v311_v14 = vstv %s404_s28 }
  0x58   :  { %v261_v15 = vadd.f32 %v260_v6, %v258_v18  ;;  %v280_v16 = vadd.f32 %v279_v7, %v277_v9  ;;  %v297_v23 = vadd.f32 %v296_v5, %v293_v11  ;;  %v308_v19 = vmul.f32 %v307_v13, %v619_v27 }
  0x59   :  { %v312_v21 = vmul.f32 %v311_v14, %v204_v35  ;;  %v315_v24 = vstv %s405_s29  ;;  %v319_v39 = vstv %s406_s30 }
  0x5a   :  { %262 = vst [vmem:[%s665_s2] sm:$0xff] %v261_v15  ;;  %v300_v22 = vadd.f32 %v299_v20, %v297_v23  ;;  %v309_v25 = vadd.f32 %v308_v19, %v305_v12  ;;  %v316_v28 = vmul.f32 %v315_v24, %v243_v60 }
  0x5b   :  { %395 = vst [vmem:[%s665_s2 + $0x8] sm:$0xff] %v280_v16 }
  0x5c   :  { %401 = vst [vmem:[%s665_s2 + $0x10] sm:$0xff] %v300_v22  ;;  %v313_v26 = vadd.f32 %v312_v21, %v309_v25 }
  0x5e   :  { %v317_v27 = vadd.f32 %v316_v28, %v313_v26 }
  0x60   :  { %v320_v29 = vadd.f32 %v319_v39, %v317_v27 }
  0x62   :  { %407 = vst [vmem:[%s665_s2 + $0x18] sm:$0xff] %v320_v29 }
  0x63   :  { %327 = vsyncpa [#allocation3], 1 }

</bundles_post_ra>
